<compile_context>
chip_gen: v5e
topology: v5e:2x2
jax: 0.10.0
libtpu: 0.0.40
codegen_flags: <defaults>
</compile_context>

<pallas_src>
import functools

import jax
import jax.numpy as jnp
from jax import lax
from jax.experimental import pallas as pl
from jax.experimental.pallas import tpu as pltpu

IN_FEATURES = 256
OUT_FEATURES = 1
LANES = 128
TILE_B = 8192                      # rows of x per grid step (8 MiB f32 / buffer)
VMEM_LIMIT_BYTES = 48 * 1024 * 1024


def _cdiv(a, b):
    return -(-a // b)


def _round_up(a, m):
    return _cdiv(a, m) * m


def linear_kernel(x_ref, w_ref, b_ref, o_ref):
    # x_ref: (gb*128, 256) VMEM  -- batch tile (trailing block may be partial)
    # w_ref: (1, 256)      VMEM  -- resident weight row (PyTorch (out, in) layout)
    # b_ref: (1,)          SMEM  -- scalar bias
    # o_ref: (gb, 128)     VMEM  -- lane-dense output slab
    gb = o_ref.shape[0]
    # Hoisted once per body: M=8 LHS keeps the MXU op on native sublane
    # granularity (all 8 rows identical; row 0 is the answer).
    w8 = jnp.broadcast_to(w_ref[...], (8, IN_FEATURES))           # (8, 256)
    bias = b_ref[0]

    def body(g, carry):
        r0 = pl.multiple_of(g * LANES, LANES)
        xg = x_ref[pl.ds(r0, LANES), :]                            # (128, 256)
        # MXU contraction over K=256 (q·kᵀ pattern: rhs contracted on dim 1).
        # Result is already lane-dense (batch rows land on lanes).
        res = lax.dot_general(
            w8, xg, (((1,), (1,)), ((), ())),
            precision=lax.Precision.HIGHEST,
            preferred_element_type=jnp.float32)                    # (8, 128)
        o_ref[pl.ds(g, 1), :] = (res[0:1, :] + bias).astype(o_ref.dtype)
        return carry

    lax.fori_loop(0, gb, body, 0, unroll=True)


def _choose_block(batch, tile_b):
    """Pick (rows-per-group gb, grid, n_rows) for the lane-dense output tiling."""
    n_rows = _cdiv(batch, LANES)                # 128-row groups covering batch
    gb_max = max(1, tile_b // LANES)
    if n_rows <= gb_max:
        return n_rows, 1, n_rows                # one (possibly partial) block
    gb = _round_up(gb_max, 8)                   # keep (8,128)-tileable out block
    grid = _cdiv(n_rows, gb)
    if grid > 1 and grid % 2 == 1:
        # v7x megacore: even tile count -> balanced split across the 2 TCs.
        gb = _round_up(_cdiv(n_rows, grid + 1), 8)
        grid = _cdiv(n_rows, gb)
    return gb, grid, n_rows


@functools.partial(jax.jit, static_argnames=("tile_b",))
def model_forward(x, w, b, *, tile_b=TILE_B):
    """Forward of nn.Linear(256, 1).

    x: (B, 256) f32, w: (1, 256) f32 (PyTorch (out, in) layout), b: (1,) f32.
    Returns (B, 1) f32.
    """
    batch = x.shape[0]
    gb, grid, n_rows = _choose_block(batch, tile_b)
    tb = gb * LANES

    cost = pl.CostEstimate(
        flops=2 * batch * IN_FEATURES,
        transcendentals=0,
        bytes_accessed=batch * IN_FEATURES * 4 + batch * 4 + IN_FEATURES * 4 + 4,
    )

    out2d = pl.pallas_call(
        linear_kernel,
        out_shape=jax.ShapeDtypeStruct((n_rows, LANES), jnp.float32),
        grid_spec=pltpu.PrefetchScalarGridSpec(
            num_scalar_prefetch=0,
            grid=(grid,),
            in_specs=[
                pl.BlockSpec((tb, IN_FEATURES), lambda i: (i, 0)),    # streamed x
                pl.BlockSpec((1, IN_FEATURES), lambda i: (0, 0)),     # resident w
                pl.BlockSpec(memory_space=pltpu.MemorySpace.SMEM),    # scalar bias
            ],
            out_specs=pl.BlockSpec((gb, LANES), lambda i: (i, 0)),
        ),
        compiler_params=pltpu.CompilerParams(
            dimension_semantics=("parallel",),    # batch tiles are independent
            vmem_limit_bytes=VMEM_LIMIT_BYTES,    # 2 x 8 MiB x-tiles > v5e default
        ),
        cost_estimate=cost,
    )(x, w, b)

    # Lane-dense (n_rows, 128) slab -> (B, 1).  Rows >= B come from the partial
    # trailing block (garbage) and are sliced off here; the slice/reshape only
    # touches B*4 bytes.
    return out2d.reshape(n_rows * LANES, OUT_FEATURES)[:batch]


def init_params(key):
    # PyTorch nn.Linear default init: U(-1/sqrt(fan_in), +1/sqrt(fan_in)).
    k_w, k_b = jax.random.split(key)
    bound = 1.0 / jnp.sqrt(float(IN_FEATURES))
    w = jax.random.uniform(k_w, (OUT_FEATURES, IN_FEATURES),
                           dtype=jnp.float32, minval=-bound, maxval=bound)
    b = jax.random.uniform(k_b, (OUT_FEATURES,),
                           dtype=jnp.float32, minval=-bound, maxval=bound)
    return w, b                                   # (1, 256), (1,)


if __name__ == "__main__":
    key = jax.random.PRNGKey(0)
    k_param, k_x1, k_x2 = jax.random.split(key, 3)
    w, b = init_params(k_param)

    # Small demo batches: one tiny, one non-multiple-of-128 to exercise the
    # partial trailing block and output slicing.
    for k_x, batch in ((k_x1, 4), (k_x2, 300)):
        x = jax.random.normal(k_x, (batch, IN_FEATURES), dtype=jnp.float32)
        out = jax.block_until_ready(model_forward(x, w, b))
        ref = jnp.sum(x * w, axis=1, keepdims=True) + b     # exact f32 reference
        assert out.shape == (batch, OUT_FEATURES), out.shape
        assert jnp.allclose(out, ref, atol=1e-4, rtol=1e-4), (
            float(jnp.max(jnp.abs(out - ref))))

    print("KERNEL_OK")
</pallas_src>

<mosaic_0001>
module attributes {stable_mosaic.version = 11 : i64} {
  func.func @linear_kernel(%arg0: i32, %arg1: memref<128x256xf32, #tpu.memory_space<vmem>>, %arg2: memref<1x256xf32, #tpu.memory_space<vmem>>, %arg3: memref<1xf32, #tpu.memory_space<smem>>, %arg4: memref<1x128xf32, #tpu.memory_space<vmem>>) attributes {dimension_semantics = [#tpu.dimension_semantics<parallel>], iteration_bounds = array<i64: 1>, scalar_prefetch = 0 : i64, scratch_operands = 0 : i64, tpu.core_type = #tpu.core_type<tc>, window_params = [{transform_indices = @transform_0, window_bounds = array<i64: 128, 256>}, {pipeline_mode = #tpu.pipeline_mode<synchronous>, transform_indices = @transform_1, window_bounds = array<i64: 1, 256>}, {transform_indices = @transform_2, window_bounds = array<i64: 1>}, {transform_indices = @transform_3, window_bounds = array<i64: 1, 128>}]} {
    %c0 = arith.constant 0 : index
    %c0_0 = arith.constant 0 : index
    %0 = vector.load %arg2[%c0, %c0_0] : memref<1x256xf32, #tpu.memory_space<vmem>>, vector<1x256xf32>
    %1 = vector.shape_cast %0 : vector<1x256xf32> to vector<1x256xf32>
    %2 = vector.broadcast %1 : vector<1x256xf32> to vector<8x256xf32>
    %c0_1 = arith.constant 0 : index
    %3 = memref.load %arg3[%c0_1] : memref<1xf32, #tpu.memory_space<smem>>
    %c0_i32 = arith.constant 0 : i32
    %c128_i32 = arith.constant 128 : i32
    %4 = arith.muli %c0_i32, %c128_i32 : i32
    %5 = tpu.assume_multiple %4, 128 : i32
    %6 = arith.index_cast %5 : i32 to index
    %c0_2 = arith.constant 0 : index
    %7 = vector.load %arg1[%6, %c0_2] : memref<128x256xf32, #tpu.memory_space<vmem>>, vector<128x256xf32>
    %cst = arith.constant dense<0.000000e+00> : vector<8x128xf32>
    %8 = tpu.matmul %2, %7, %cst {dimension_numbers = #tpu.dot_dimension_numbers<[1], [1], [0], [0], [0, 0, 1, 0], [], []>, precision = #tpu.contract_precision<fp32>} : vector<8x256xf32>, vector<128x256xf32>, vector<8x128xf32> -> vector<8x128xf32>
    %9 = vector.extract_strided_slice %8 {offsets = [0, 0], sizes = [1, 128], strides = [1, 1]} : vector<8x128xf32> to vector<1x128xf32>
    %10 = vector.broadcast %3 : f32 to vector<1x128xf32>
    %11 = arith.addf %9, %10 : vector<1x128xf32>
    %12 = arith.index_cast %c0_i32 : i32 to index
    %c0_3 = arith.constant 0 : index
    %13 = vector.load %arg4[%12, %c0_3] : memref<1x128xf32, #tpu.memory_space<vmem>>, vector<1x128xf32>
    tpu.vector_store %arg4[%12, %c0_3], %11 {strides = array<i32>} : memref<1x128xf32, #tpu.memory_space<vmem>>, vector<1x128xf32>,
    %c1_i32 = arith.constant 1 : i32
    return
  }
  func.func @transform_0(%arg0: i32) -> (i32, i32) {
    %c0_i32 = arith.constant 0 : i32
    %c0_i32_0 = arith.constant 0 : i32
    return %arg0, %c0_i32 : i32, i32
  }
  func.func @transform_1(%arg0: i32) -> (i32, i32) {
    %c0_i32 = arith.constant 0 : i32
    %c0_i32_0 = arith.constant 0 : i32
    %c0_i32_1 = arith.constant 0 : i32
    return %c0_i32, %c0_i32_0 : i32, i32
  }
  func.func @transform_2(%arg0: i32) -> i32 {
    %c0_i32 = arith.constant 0 : i32
    %c0_i32_0 = arith.constant 0 : i32
    return %c0_i32 : i32
  }
  func.func @transform_3(%arg0: i32) -> (i32, i32) {
    %c0_i32 = arith.constant 0 : i32
    %c0_i32_0 = arith.constant 0 : i32
    return %arg0, %c0_i32 : i32, i32
  }
}

</mosaic_0001>

<bundles_post_ra>
// kernel: model_forward.1
= control target key start
LH: loop header
LB: loop body
LE: loop exit
PB: predicated region body
PF: predicated region fallthrough
CT: control target
= control target key end

     0   :  { %9 = vsyncpa [#allocation4], 0  ;;  %s1555_s0 = inlined_call_operand.hbm [shape: f32[4,256], index: 0, kind: input, shape index: {}]   ;;  %s1556_s1 = inlined_call_operand.vmem [shape: f32[1,256], index: 1, kind: input, shape index: {}]   ;;  %s1557_s2 = inlined_call_operand.<no memory space> [shape: f32[1], index: 2, kind: input, shape index: {}]   ;;  %s1558_s3 = inlined_call_operand.vmem [shape: f32[1,128], index: 3, kind: output, shape index: {}]  }
   0x1   :  { %13 = vsyncadd [#allocation4], 3968  ;;  %s14_s14 = sshll.u32 %s1555_s0, 4  ;;  %s927_s15 = smov [#allocation3]   ;;  %s15_s14 = int_to_ptr.hbm [resolvable:$true] %s14_s14 }
   0x2   :  { %s16_s16 = sshll.u32 %s927_s15, 4  ;;  %s928_s17 = smov 128   ;;  %s17_s16 = int_to_ptr.vmem [resolvable:$true] %s16_s16 }
   0x3   :  { %s929_s18 = smov 8  }
   0x4   :  { %22 = dma.hbm_to_vmem [thread:$0]  %s15_s14, 128, %s17_s16, [#allocation4], %s928_s17, %s928_s17, %s929_s18  }
   0x5   :  { %925 = dma.done.wait [#allocation4], 4096  }
   0x6   :  { %926 = vsyncadd [#allocation4], 4294963200  ;;  %v47_v0 = vld [vmem:[#allocation3 + $0x30] sm:$0xff]  ;;  %v48_v1 = vld [vmem:[#allocation3 + $0x38] sm:$0xff] }
   0x7   :  { %117 = vst [vmem:[#allocation1 + $0x30] ss:$2 sm:$0xff] %v47_v0  ;;  %v45_v2 = vld [vmem:[#allocation3 + $0x20] sm:$0xff]  ;;  %v46_v3 = vld [vmem:[#allocation3 + $0x28] sm:$0xff]  ;;  %v43_v4 = vld [vmem:[#allocation3 + $0x10] sm:$0xff] }
   0x8   :  { %119 = vst [vmem:[#allocation1 + $0x31] ss:$2 sm:$0xff] %v48_v1  ;;  %v44_v5 = vld [vmem:[#allocation3 + $0x18] sm:$0xff]  ;;  %v55_v6 = vld [vmem:[#allocation3 + $0x70] sm:$0xff]  ;;  %v41_v8 = vld [vmem:[#allocation3] sm:$0xff] }
   0x9   :  { %113 = vst [vmem:[#allocation1 + $0x20] ss:$2 sm:$0xff] %v45_v2  ;;  %v56_v7 = vld [vmem:[#allocation3 + $0x78] sm:$0xff]  ;;  %v53_v11 = vld [vmem:[#allocation3 + $0x60] sm:$0xff]  ;;  %v54_v12 = vld [vmem:[#allocation3 + $0x68] sm:$0xff] }
   0xa   :  { %115 = vst [vmem:[#allocation1 + $0x21] ss:$2 sm:$0xff] %v46_v3  ;;  %v42_v15 = vld [vmem:[#allocation3 + $0x8] sm:$0xff]  ;;  %v51_v16 = vld [vmem:[#allocation3 + $0x50] sm:$0xff]  ;;  %v52_v17 = vld [vmem:[#allocation3 + $0x58] sm:$0xff] }
   0xb   :  { %109 = vst [vmem:[#allocation1 + $0x10] ss:$2 sm:$0xff] %v43_v4  ;;  %v63_v20 = vld [vmem:[#allocation3 + $0xb0] sm:$0xff]  ;;  %v64_v21 = vld [vmem:[#allocation3 + $0xb8] sm:$0xff]  ;;  %v61_v24 = vld [vmem:[#allocation3 + $0xa0] sm:$0xff] }
   0xc   :  { %111 = vst [vmem:[#allocation1 + $0x11] ss:$2 sm:$0xff] %v44_v5  ;;  %v62_v25 = vld [vmem:[#allocation3 + $0xa8] sm:$0xff]  ;;  %v59_v28 = vld [vmem:[#allocation3 + $0x90] sm:$0xff]  ;;  %v60_v29 = vld [vmem:[#allocation3 + $0x98] sm:$0xff] }
   0xd   :  { %105 = vst [vmem:[#allocation1] ss:$2 sm:$0xff] %v41_v8  ;;  %v71_v32 = vld [vmem:[#allocation3 + $0xf0] sm:$0xff]  ;;  %v72_v33 = vld [vmem:[#allocation3 + $0xf8] sm:$0xff]  ;;  %v69_v36 = vld [vmem:[#allocation3 + $0xe0] sm:$0xff] }
   0xe   :  { %107 = vst [vmem:[#allocation1 + $0x1] ss:$2 sm:$0xff] %v42_v15  ;;  %v70_v37 = vld [vmem:[#allocation3 + $0xe8] sm:$0xff]  ;;  %v67_v38 = vld [vmem:[#allocation3 + $0xd0] sm:$0xff]  ;;  %v68_v41 = vld [vmem:[#allocation3 + $0xd8] sm:$0xff] }
   0xf   :  { %v953_v9 = vld.sshfl [vmem:[#allocation1 + $0x30] sm:$0xff pattern:$0x75316420]  ;;  %v955_v10 = vld.sshfl [vmem:[#allocation1 + $0x38] sm:$0xff pattern:$0x75316420] }
  0x10   :  { %134 = vst [vmem:[#allocation1 + $0x30] ss:$2 sm:$0xff] %v55_v6  ;;  %v49_v43 = vld [vmem:[#allocation3 + $0x40] sm:$0xff]  ;;  %v50_v47 = vld [vmem:[#allocation3 + $0x48] sm:$0xff] }
  0x11   :  { %135 = vst [vmem:[#allocation1 + $0x31] ss:$2 sm:$0xff] %v56_v7  ;;  %v957_v13 = vld.sshfl [vmem:[#allocation1 + $0x20] sm:$0xff pattern:$0x75316420]  ;;  %v57_v56 = vld [vmem:[#allocation3 + $0x80] sm:$0xff] }
  0x12   :  { %v959_v14 = vld.sshfl [vmem:[#allocation1 + $0x28] sm:$0xff pattern:$0x75316420]  ;;  %v58_v59 = vld [vmem:[#allocation3 + $0x88] sm:$0xff] }
  0x13   :  { %132 = vst [vmem:[#allocation1 + $0x20] ss:$2 sm:$0xff] %v53_v11  ;;  %v961_v18 = vld.sshfl [vmem:[#allocation1 + $0x10] sm:$0xff pattern:$0x75316420]  ;;  %v65_v5 = vld [vmem:[#allocation3 + $0xc0] sm:$0xff] }
  0x14   :  { %133 = vst [vmem:[#allocation1 + $0x21] ss:$2 sm:$0xff] %v54_v12  ;;  %v963_v19 = vld.sshfl [vmem:[#allocation1 + $0x18] sm:$0xff pattern:$0x75316420]  ;;  %v66_v7 = vld [vmem:[#allocation3 + $0xc8] sm:$0xff] }
  0x15   :  { %130 = vst [vmem:[#allocation1 + $0x10] ss:$2 sm:$0xff] %v51_v16  ;;  %v985_v42 = vld.sshfl [vmem:[#allocation1] sm:$0xff pattern:$0x75316420] }
  0x16   :  { %131 = vst [vmem:[#allocation1 + $0x11] ss:$2 sm:$0xff] %v52_v17  ;;  %v987_v44 = vld.sshfl [vmem:[#allocation1 + $0x8] sm:$0xff pattern:$0x75316420] }
  0x17   :  { %128 = vst [vmem:[#allocation1] ss:$2 sm:$0xff] %v49_v43 }
  0x18   :  { %v965_v22 = vld.sshfl [vmem:[#allocation1 + $0x30] sm:$0xff pattern:$0x75316420]  ;;  %v967_v23 = vld.sshfl [vmem:[#allocation1 + $0x38] sm:$0xff pattern:$0x75316420] }
  0x19   :  { %150 = vst [vmem:[#allocation1 + $0x30] ss:$2 sm:$0xff] %v63_v20 }
  0x1a   :  { %151 = vst [vmem:[#allocation1 + $0x31] ss:$2 sm:$0xff] %v64_v21 }
  0x1b   :  { %v969_v26 = vld.sshfl [vmem:[#allocation1 + $0x20] sm:$0xff pattern:$0x75316420]  ;;  %v971_v27 = vld.sshfl [vmem:[#allocation1 + $0x28] sm:$0xff pattern:$0x75316420] }
  0x1c   :  { %148 = vst [vmem:[#allocation1 + $0x20] ss:$2 sm:$0xff] %v61_v24 }
  0x1d   :  { %149 = vst [vmem:[#allocation1 + $0x21] ss:$2 sm:$0xff] %v62_v25  ;;  %v973_v30 = vld.sshfl [vmem:[#allocation1 + $0x10] sm:$0xff pattern:$0x75316420] }
  0x1e   :  { %v975_v31 = vld.sshfl [vmem:[#allocation1 + $0x18] sm:$0xff pattern:$0x75316420]  ;;  %129 = vst [vmem:[#allocation1 + $0x1] ss:$2 sm:$0xff] %v50_v47 }
  0x1f   :  { %146 = vst [vmem:[#allocation1 + $0x10] ss:$2 sm:$0xff] %v59_v28 }
  0x20   :  { %147 = vst [vmem:[#allocation1 + $0x11] ss:$2 sm:$0xff] %v60_v29 }
  0x21   :  { %v977_v34 = vld.sshfl [vmem:[#allocation1 + $0x30] sm:$0xff pattern:$0x75316420]  ;;  %v979_v35 = vld.sshfl [vmem:[#allocation1 + $0x38] sm:$0xff pattern:$0x75316420] }
  0x22   :  { %166 = vst [vmem:[#allocation1 + $0x30] ss:$2 sm:$0xff] %v71_v32  ;;  %v1034_v12 = vand.u32 4294901760, %v977_v34 }
  0x23   :  { %167 = vst [vmem:[#allocation1 + $0x31] ss:$2 sm:$0xff] %v72_v33 }
  0x24   :  { %v981_v39 = vld.sshfl [vmem:[#allocation1 + $0x20] sm:$0xff pattern:$0x75316420]  ;;  %v983_v40 = vld.sshfl [vmem:[#allocation1 + $0x28] sm:$0xff pattern:$0x75316420]  ;;  %v1041_v16 = vsub.f32 %v977_v34, %v1034_v12 }
  0x25   :  { %164 = vst [vmem:[#allocation1 + $0x20] ss:$2 sm:$0xff] %v69_v36  ;;  %v1012_v60 = vld.sshfl [vmem:[#allocation1] sm:$0xff pattern:$0x75316420]  ;;  %v1037_v15 = vand.u32 4294901760, %v981_v39 }
  0x26   :  { %165 = vst [vmem:[#allocation1 + $0x21] ss:$2 sm:$0xff] %v70_v37  ;;  %v1014_v61 = vld.sshfl [vmem:[#allocation1 + $0x8] sm:$0xff pattern:$0x75316420]  ;;  %v1567_v25 = vand.u32 4294901760, %v1041_v16 }
  0x27   :  { %v154_v45 = vld.sshfl [vmem:[#allocation1 + $0x10] sm:$0xff pattern:$0x75316420]  ;;  %v989_v46 = vld.sshfl [vmem:[#allocation1 + $0x18] sm:$0xff pattern:$0x75316420]  ;;  %v1055_v28 = vsub.f32 %v981_v39, %v1037_v15 }
  0x28   :  { %162 = vst [vmem:[#allocation1 + $0x10] ss:$2 sm:$0xff] %v67_v38  ;;  %v1045_v21 = vand.u32 4294901760, %v154_v45  ;;  %v276_v34 = vsub.f32 %v1041_v16, %v1567_v25 }
  0x29   :  { %163 = vst [vmem:[#allocation1 + $0x11] ss:$2 sm:$0xff] %v68_v41  ;;  %v1566_v37 = vand.u32 4294901760, %v1055_v28 }
  0x2a   :  { %v174_v48 = vld.sshfl [vmem:[#allocation1 + $0x30] sm:$0xff pattern:$0x75316420]  ;;  %144 = vst [vmem:[#allocation1] ss:$2 sm:$0xff] %v57_v56  ;;  %v1060_v32 = vsub.f32 %v154_v45, %v1045_v21  ;;  %v277_v41 = vand.u32 4294901760, %v276_v34 }
  0x2b   :  { %v991_v49 = vand.u32 4294901760, %v174_v48  ;;  %145 = vst [vmem:[#allocation1 + $0x1] ss:$2 sm:$0xff] %v58_v59  ;;  %v282_v43 = vsub.f32 %v1055_v28, %v1566_v37  ;;  %v1080_v45 = vand.u32 4294901760, %v965_v22  ;;  %v1138_v34 = vand.u32 4294901760, %v953_v9 }
  0x2c   :  { %v1565_v39 = vand.u32 4294901760, %v1060_v32 }
  0x2d   :  { %209 = vmatpush.xpose.msra.mxu0 %v991_v49  ;;  %v172_v50 = vld.sshfl [vmem:[#allocation1 + $0x20] sm:$0xff pattern:$0x75316420]  ;;  %v995_v51 = vsub.f32 %v174_v48, %v991_v49  ;;  %405 = vmatpush.xpose.msra.mxu3 %v991_v49 }
  0x2e   :  { %v998_v52 = vand.u32 4294901760, %v172_v50  ;;  %v288_v48 = vsub.f32 %v1060_v32, %v1565_v39 }
  0x2f   :  { %352 = vmatpush.xpose.msra.mxu2 %v995_v51  ;;  %v1574_v53 = vand.u32 4294901760, %v995_v51 }
  0x30   :  { %v170_v54 = vld.sshfl [vmem:[#allocation1 + $0x10] sm:$0xff pattern:$0x75316420]  ;;  %v1003_v55 = vsub.f32 %v172_v50, %v998_v52  ;;  %v283_v50 = vand.u32 4294901760, %v282_v43  ;;  %v289_v59 = vand.u32 4294901760, %v288_v48  ;;  %v1149_v48 = vand.u32 4294901760, %v957_v13 }
  0x31   :  { %211 = vmatpush.xpose.msra.mxu0 %v998_v52  ;;  %v1006_v57 = vand.u32 4294901760, %v170_v54  ;;  %v252_v58 = vsub.f32 %v995_v51, %v1574_v53  ;;  %407 = vmatpush.xpose.msra.mxu3 %v998_v52 }
  0x32   :  { %v1572_v63 = vand.u32 4294901760, %v1003_v55  ;;  %v152_v8 = vld.sshfl [vmem:[#allocation1] sm:$0xff pattern:$0x75316420] }
  0x33   :  { %v253_v62 = vand.u32 4294901760, %v252_v58  ;;  %355 = vmatpush.xpose.msra.mxu2 %v1003_v55  ;;  %v1019_v0 = vsub.f32 %v170_v54, %v1006_v57  ;;  %v1031_v11 = vld.sshfl [vmem:[#allocation1 + $0x8] sm:$0xff pattern:$0x75316420]  ;;  %v1070_v36 = vand.u32 4294901760, %v152_v8  ;;  %v1092_v54 = vand.u32 4294901760, %v969_v26 }
  0x34   :  { %v258_v1 = vsub.f32 %v1003_v55, %v1572_v63  ;;  %160 = vst [vmem:[#allocation1] ss:$2 sm:$0xff] %v65_v5  ;;  %v1097_v58 = vsub.f32 %v965_v22, %v1080_v45 }
  0x35   :  { %213 = vmatpush.xpose.msra.mxu0 %v1006_v57  ;;  %254 = vmatpush.xpose.msra.mxu1 %v253_v62  ;;  %v1570_v2 = vand.u32 4294901760, %v1019_v0  ;;  %161 = vst [vmem:[#allocation1 + $0x1] ss:$2 sm:$0xff] %v66_v7  ;;  %v1083_v47 = vsub.f32 %v152_v8, %v1070_v36  ;;  %v1111_v22 = vsub.f32 %v969_v26, %v1092_v54 }
  0x36   :  { %409 = vmatpush.xpose.msra.mxu3 %v1006_v57  ;;  %v259_v3 = vand.u32 4294901760, %v258_v1  ;;  %v1106_v1 = vand.u32 4294901760, %v973_v30 }
  0x37   :  { %358 = vmatpush.xpose.msra.mxu2 %v1019_v0  ;;  %v264_v4 = vsub.f32 %v1019_v0, %v1570_v2  ;;  %v1563_v56 = vand.u32 4294901760, %v1083_v47  ;;  %v1561_v7 = vand.u32 4294901760, %v1111_v22 }
  0x38   :  { %v1125_v26 = vsub.f32 %v973_v30, %v1106_v1 }
  0x39   :  { %260 = vmatpush.xpose.msra.mxu1 %v259_v3  ;;  %v265_v6 = vand.u32 4294901760, %v264_v4  ;;  %v294_v62 = vsub.f32 %v1083_v47, %v1563_v56  ;;  %v1562_v3 = vand.u32 4294901760, %v1097_v58  ;;  %v1116_v4 = vand.u32 4294901760, %v1012_v60 }
  0x3a   :  { %v1559_v30 = vand.u32 4294901760, %v1125_v26 }
  0x3b   :  { %v295_v5 = vand.u32 4294901760, %v294_v62  ;;  %v1131_v8 = vsub.f32 %v1012_v60, %v1116_v4  ;;  %v173_v62 = vld.sshfl [vmem:[#allocation1 + $0x28] sm:$0xff pattern:$0x75316420] }
  0x3c   :  { %v168_v17 = vld.sshfl [vmem:[#allocation1] sm:$0xff pattern:$0x75316420]  ;;  %v312_v43 = vsub.f32 %v1125_v26, %v1559_v30  ;;  %v1172_v30 = vand.u32 4294901760, %v173_v62 }
  0x3d   :  { %266 = vmatpush.xpose.msra.mxu1 %v265_v6  ;;  %v1043_v20 = vand.u32 4294901760, %v168_v17  ;;  %v300_v6 = vsub.f32 %v1097_v58, %v1562_v3  ;;  %v1560_v60 = vand.u32 4294901760, %v1131_v8 }
  0x3f   :  { %215 = vmatpush.xpose.msra.mxu0 %v1043_v20  ;;  %v1049_v24 = vsub.f32 %v168_v17, %v1043_v20  ;;  %411 = vmatpush.xpose.msra.mxu3 %v1043_v20  ;;  %v301_v17 = vand.u32 4294901760, %v300_v6  ;;  %v313_v6 = vand.u32 4294901760, %v312_v43  ;;  %v171_v43 = vld.sshfl [vmem:[#allocation1 + $0x18] sm:$0xff pattern:$0x75316420] }
  0x41   :  { %361 = vmatpush.xpose.msra.mxu2 %v1049_v24  ;;  %v1569_v29 = vand.u32 4294901760, %v1049_v24 }
  0x43   :  { %217 = vmatpush.xpose.msra.mxu0 %v1034_v12  ;;  %v270_v33 = vsub.f32 %v1049_v24, %v1569_v29  ;;  %413 = vmatpush.xpose.msra.mxu3 %v1034_v12 }
  0x45   :  { %v271_v38 = vand.u32 4294901760, %v270_v33  ;;  %364 = vmatpush.xpose.msra.mxu2 %v1041_v16  ;;  %v306_v33 = vsub.f32 %v1111_v22, %v1561_v7 }
  0x47   :  { %219 = vmatpush.xpose.msra.mxu0 %v1037_v15  ;;  %272 = vmatpush.xpose.msra.mxu1 %v271_v38  ;;  %v175_v38 = vld.sshfl [vmem:[#allocation1 + $0x38] sm:$0xff pattern:$0x75316420] }
  0x48   :  { %415 = vmatpush.xpose.msra.mxu3 %v1037_v15 }
  0x49   :  { %367 = vmatpush.xpose.msra.mxu2 %v1055_v28 }
  0x4b   :  { %221 = vmatpush.xpose.msra.mxu0 %v1045_v21  ;;  %278 = vmatpush.xpose.msra.mxu1 %v277_v41  ;;  %v307_v41 = vand.u32 4294901760, %v306_v33  ;;  %v1169_v33 = vsub.f32 %v957_v13, %v1149_v48  ;;  %v1183_v13 = vand.u32 4294901760, %v985_v42 }
  0x4c   :  { %417 = vmatpush.xpose.msra.mxu3 %v1045_v21 }
  0x4d   :  { %370 = vmatpush.xpose.msra.mxu2 %v1060_v32  ;;  %v1568_v3 = vand.u32 4294901760, %v1169_v33 }
  0x4f   :  { %223 = vmatpush.xpose.msra.mxu0 %v1070_v36  ;;  %284 = vmatpush.xpose.msra.mxu1 %v283_v50  ;;  %v1153_v50 = vsub.f32 %v953_v9, %v1138_v34 }
  0x50   :  { %419 = vmatpush.xpose.msra.mxu3 %v1070_v36 }
  0x51   :  { %373 = vmatpush.xpose.msra.mxu2 %v1083_v47  ;;  %v1564_v9 = vand.u32 4294901760, %v1153_v50 }
  0x53   :  { %225 = vmatpush.xpose.msra.mxu0 %v1080_v45  ;;  %290 = vmatpush.xpose.msra.mxu1 %v289_v59  ;;  %v1157_v59 = vand.u32 4294901760, %v175_v38  ;;  %v324_v7 = vsub.f32 %v1153_v50, %v1564_v9  ;;  %v169_v9 = vld.sshfl [vmem:[#allocation1 + $0x8] sm:$0xff pattern:$0x75316420] }
  0x54   :  { %421 = vmatpush.xpose.msra.mxu3 %v1080_v45 }
  0x55   :  { %376 = vmatpush.xpose.msra.mxu2 %v1097_v58  ;;  %v325_v39 = vand.u32 4294901760, %v324_v7 }
  0x57   :  { %227 = vmatpush.xpose.msra.mxu0 %v1092_v54  ;;  %296 = vmatpush.xpose.msra.mxu1 %v295_v5  ;;  %v318_v5 = vsub.f32 %v1131_v8, %v1560_v60  ;;  %v1176_v60 = vsub.f32 %v175_v38, %v1157_v59  ;;  %v1192_v38 = vsub.f32 %v173_v62, %v1172_v30 }
  0x58   :  { %423 = vmatpush.xpose.msra.mxu3 %v1092_v54  ;;  %v1205_v62 = vsub.f32 %v985_v42, %v1183_v13 }
  0x59   :  { %379 = vmatpush.xpose.msra.mxu2 %v1111_v22  ;;  %v1575_v25 = vand.u32 4294901760, %v1192_v38 }
  0x5a   :  { %v1576_v2 = vand.u32 4294901760, %v1205_v62 }
  0x5b   :  { %229 = vmatpush.xpose.msra.mxu0 %v1106_v1  ;;  %302 = vmatpush.xpose.msra.mxu1 %v301_v17  ;;  %v1164_v17 = vand.u32 4294901760, %v961_v18 }
  0x5c   :  { %425 = vmatpush.xpose.msra.mxu3 %v1106_v1  ;;  %v342_v53 = vsub.f32 %v1205_v62, %v1576_v2  ;;  %v1252_v2 = vand.u32 4294901760, %v983_v40 }
  0x5d   :  { %382 = vmatpush.xpose.msra.mxu2 %v1125_v26  ;;  %v1188_v56 = vsub.f32 %v961_v18, %v1164_v17  ;;  %v330_v18 = vsub.f32 %v1169_v33, %v1568_v3  ;;  %v1216_v3 = vand.u32 4294901760, %v169_v9 }
  0x5f   :  { %231 = vmatpush.xpose.msra.mxu0 %v1116_v4  ;;  %308 = vmatpush.xpose.msra.mxu1 %v307_v41  ;;  %v319_v41 = vand.u32 4294901760, %v318_v5  ;;  %v1571_v5 = vand.u32 4294901760, %v1176_v60  ;;  %v1573_v37 = vand.u32 4294901760, %v1188_v56  ;;  %v331_v42 = vand.u32 4294901760, %v330_v18 }
  0x60   :  { %427 = vmatpush.xpose.msra.mxu3 %v1116_v4  ;;  %v1233_v18 = vand.u32 4294901760, %v979_v35 }
  0x61   :  { %385 = vmatpush.xpose.msra.mxu2 %v1131_v8  ;;  %v593_v7 = vsub.f32 %v1176_v60, %v1571_v5  ;;  %v336_v29 = vsub.f32 %v1188_v56, %v1573_v37  ;;  %v599_v5 = vsub.f32 %v1192_v38, %v1575_v25  ;;  %v1584_v25 = vand.u32 4294901760, %v995_v51 }
  0x62   :  { %v343_v51 = vand.u32 4294901760, %v342_v53  ;;  %v1586_v53 = vand.u32 4294901760, %v1019_v0  ;;  %v1587_v0 = vand.u32 4294901760, %v1049_v24  ;;  %v1588_v24 = vand.u32 4294901760, %v1041_v16 }
  0x63   :  { %233 = vmatpush.xpose.msra.mxu0 %v1138_v34  ;;  %314 = vmatpush.xpose.msra.mxu1 %v313_v6  ;;  %v1196_v6 = vand.u32 4294901760, %v171_v43  ;;  %v337_v37 = vand.u32 4294901760, %v336_v29  ;;  %v1249_v29 = vsub.f32 %v979_v35, %v1233_v18  ;;  %v1316_v16 = vand.u32 4294901760, %v971_v27 }
  0x64   :  { %429 = vmatpush.xpose.msra.mxu3 %v1138_v34 }
  0x65   :  { %388 = vmatpush.xpose.msra.mxu2 %v1153_v50 }
  0x67   :  { %235 = vmatpush.xpose.msra.mxu0 %v1149_v48  ;;  %320 = vmatpush.xpose.msra.mxu1 %v319_v41  ;;  %v1214_v41 = vsub.f32 %v171_v43, %v1196_v6  ;;  %v594_v43 = vand.u32 4294901760, %v593_v7  ;;  %v600_v7 = vand.u32 4294901760, %v599_v5  ;;  %v1258_v5 = vand.u32 4294901760, %v989_v46 }
  0x68   :  { %431 = vmatpush.xpose.msra.mxu3 %v1149_v48 }
  0x69   :  { %391 = vmatpush.xpose.msra.mxu2 %v1169_v33  ;;  %1583 = vst [vmem:[#allocation6_spill] sm:$0xff] %v1214_v41  ;;  %v1577_v63 = vand.u32 4294901760, %v1214_v41 }
  0x6b   :  { %237 = vmatpush.xpose.msra.mxu0 %v1164_v17  ;;  %326 = vmatpush.xpose.msra.mxu1 %v325_v39  ;;  %v1230_v39 = vsub.f32 %v169_v9, %v1216_v3  ;;  %v605_v9 = vsub.f32 %v1214_v41, %v1577_v63  ;;  %v616_v63 = vand.u32 4294901760, %v1249_v29  ;;  %v1266_v41 = vsub.f32 %v983_v40, %v1252_v2 }
  0x6c   :  { %433 = vmatpush.xpose.msra.mxu3 %v1164_v17 }
  0x6d   :  { %394 = vmatpush.xpose.msra.mxu2 %v1188_v56  ;;  %v617_v40 = vsub.f32 %v1249_v29, %v616_v63 }
  0x6f   :  { %239 = vmatpush.xpose.msra.mxu0 %v1183_v13  ;;  %332 = vmatpush.xpose.msra.mxu1 %v331_v42  ;;  %v610_v42 = vand.u32 4294901760, %v1230_v39 }
  0x70   :  { %435 = vmatpush.xpose.msra.mxu3 %v1183_v13 }
  0x71   :  { %397 = vmatpush.xpose.msra.mxu2 %v1205_v62  ;;  %v611_v35 = vsub.f32 %v1230_v39, %v610_v42 }
  0x73   :  { %446 = vmatpush.xpose.msrb.mxu0 %v1584_v25  ;;  %338 = vmatpush.xpose.msra.mxu1 %v337_v37  ;;  %v1585_v25 = vand.u32 4294901760, %v1003_v55  ;;  %v1274_v55 = vsub.f32 %v989_v46, %v1258_v5  ;;  %v1277_v37 = vand.u32 4294901760, %v1031_v11 }
  0x74   :  { %595 = vmatpush.xpose.msrb.mxu3 %v594_v43  ;;  %v606_v43 = vand.u32 4294901760, %v605_v9  ;;  %v1582_v9 = vand.u32 4294901760, %v1266_v41 }
  0x75   :  { %550 = vmatpush.xpose.msrb.mxu2 %v1157_v59  ;;  %v1580_v46 = vand.u32 4294901760, %v1274_v55 }
  0x77   :  { %450 = vmatpush.xpose.msrb.mxu0 %v1585_v25  ;;  %344 = vmatpush.xpose.msra.mxu1 %v343_v51  ;;  %v618_v51 = vand.u32 4294901760, %v617_v40  ;;  %v623_v25 = vsub.f32 %v1266_v41, %v1582_v9 }
  0x78   :  { %601 = vmatpush.xpose.msrb.mxu3 %v600_v7  ;;  %v612_v7 = vand.u32 4294901760, %v611_v35  ;;  %v1309_v35 = vld [vmem:[%s1556_s1] sm:$0x3] }
  0x79   :  { %552 = vmatpush.xpose.msrb.mxu2 %v1172_v30 }
  0x7b   :  { %454 = vmatpush.xpose.msrb.mxu0 %v1586_v53  ;;  %513 = vmatpush.xpose.msrb.mxu1 %v991_v49  ;;  %v1290_v49 = vsub.f32 %v1031_v11, %v1277_v37  ;;  %v624_v53 = vand.u32 4294901760, %v623_v25 }
  0x7c   :  { %607 = vmatpush.xpose.msrb.mxu3 %v606_v43  ;;  %v1296_v43 = vand.u32 4294901760, %v967_v23 }
  0x7d   :  { %554 = vmatpush.xpose.msrb.mxu2 %v1196_v6  ;;  %v1581_v11 = vand.u32 4294901760, %v1290_v49 }
  0x7f   :  { %458 = vmatpush.xpose.msrb.mxu0 %v1587_v0  ;;  %515 = vmatpush.xpose.msrb.mxu1 %v998_v52  ;;  %v629_v52 = vsub.f32 %v1274_v55, %v1580_v46  ;;  %v1589_v0 = vand.u32 4294901760, %v1055_v28  ;;  %v1334_v46 = vand.u32 4294901760, %v975_v31 }
  0x80   :  { %613 = vmatpush.xpose.msrb.mxu3 %v612_v7  ;;  %v1313_v7 = vsub.f32 %v967_v23, %v1296_v43  ;;  %v635_v23 = vsub.f32 %v1290_v49, %v1581_v11 }
  0x81   :  { %556 = vmatpush.xpose.msrb.mxu2 %v1216_v3  ;;  %v1351_v11 = vsub.f32 %v975_v31, %v1334_v46 }
  0x82   :  { %v640_v25 = vand.u32 4294901760, %v1313_v7 }
  0x83   :  { %462 = vmatpush.xpose.msrb.mxu0 %v1588_v24  ;;  %517 = vmatpush.xpose.msrb.mxu1 %v1006_v57  ;;  %v33_v57 = vperm.slane %v1309_v35, 0  ;;  %v1331_v24 = vsub.f32 %v971_v27, %v1316_v16  ;;  %v1343_v27 = vand.u32 4294901760, %v1014_v61 }
  0x84   :  { %619 = vmatpush.xpose.msrb.mxu3 %v618_v51  ;;  %v630_v51 = vand.u32 4294901760, %v629_v52  ;;  %v1590_v52 = vand.u32 4294901760, %v1060_v32  ;;  %v1591_v32 = vand.u32 4294901760, %v1083_v47 }
  0x85   :  { %558 = vmatpush.xpose.msrb.mxu2 %v1233_v18  ;;  %v1320_v40 = vand.u32 4294901760, %v33_v57 }
  0x87   :  { %466 = vmatpush.xpose.msrb.mxu0 %v1589_v0  ;;  %519 = vmatpush.xpose.msrb.mxu1 %v1043_v20  ;;  %v241_v28 = vsub.f32 %v33_v57, %v1320_v40  ;;  %v641_v57 = vsub.f32 %v1313_v7, %v640_v25  ;;  %v646_v0 = vand.u32 4294901760, %v1331_v24 }
  0x88   :  { %625 = vmatpush.xpose.msrb.mxu3 %v624_v53  ;;  %346 = vmatmul.f32.vlgmr.msra.gmra.mxu1 %v1320_v40  ;;  %v636_v53 = vand.u32 4294901760, %v635_v23  ;;  %v1362_v23 = vand.u32 4294901760, %v955_v10 }
  0x89   :  { %560 = vmatpush.xpose.msrb.mxu2 %v1252_v2  ;;  %v242_v20 = vand.u32 4294901760, %v241_v28  ;;  %v642_v31 = vand.u32 4294901760, %v641_v57 }
  0x8a   :  { %400 = vmatmul.f32.vlgmr.msra.gmra.mxu2 %v241_v28  ;;  %v1375_v47 = vsub.f32 %v955_v10, %v1362_v23 }
  0x8b   :  { %470 = vmatpush.xpose.msrb.mxu0 %v1590_v52  ;;  %521 = vmatpush.xpose.msrb.mxu1 %v1034_v12  ;;  %v243_v9 = vsub.f32 %v241_v28, %v242_v20  ;;  %v647_v28 = vsub.f32 %v1331_v24, %v646_v0 }
  0x8c   :  { %631 = vmatpush.xpose.msrb.mxu3 %v630_v51  ;;  %v1359_v51 = vsub.f32 %v1014_v61, %v1343_v27 }
  0x8d   :  { %562 = vmatpush.xpose.msrb.mxu2 %v1258_v5  ;;  %439 = vmatmul.f32.vlgmr.msra.gmra.mxu3 %v242_v20  ;;  %v244_v12 = vand.u32 4294901760, %v243_v9  ;;  %v652_v9 = vand.u32 4294901760, %v1351_v11  ;;  %v648_v20 = vand.u32 4294901760, %v647_v28 }
  0x8e   :  { %v658_v61 = vand.u32 4294901760, %v1359_v51 }
  0x8f   :  { %474 = vmatpush.xpose.msrb.mxu0 %v1591_v32  ;;  %523 = vmatpush.xpose.msrb.mxu1 %v1037_v15  ;;  %v1592_v15 = vand.u32 4294901760, %v1097_v58  ;;  %v653_v52 = vsub.f32 %v1351_v11, %v652_v9  ;;  %v1593_v58 = vand.u32 4294901760, %v1111_v22  ;;  %v1396_v32 = vand.u32 4294901760, %v963_v19 }
  0x90   :  { %637 = vmatpush.xpose.msrb.mxu3 %v636_v53  ;;  %245 = vmatmul.f32.vlgmr.msra.gmra.mxu0 %v244_v12  ;;  %v1381_v53 = vand.u32 4294901760, %v959_v14  ;;  %v659_v10 = vsub.f32 %v1359_v51, %v658_v61  ;;  %v1594_v22 = vand.u32 4294901760, %v1125_v26 }
  0x91   :  { %564 = vmatpush.xpose.msrb.mxu2 %v1277_v37  ;;  %v654_v57 = vand.u32 4294901760, %v653_v52 }
  0x92   :  { %v1393_v12 = vsub.f32 %v959_v14, %v1381_v53  ;;  %v34_v14 = vperm.slane %v1309_v35, 1 }
  0x93   :  { %478 = vmatpush.xpose.msrb.mxu0 %v1592_v15  ;;  %525 = vmatpush.xpose.msrb.mxu1 %v1045_v21  ;;  %v664_v21 = vand.u32 4294901760, %v1375_v47  ;;  %v1409_v15 = vsub.f32 %v963_v19, %v1396_v32 }
  0x94   :  { %643 = vmatpush.xpose.msrb.mxu3 %v642_v31  ;;  %v670_v28 = vand.u32 4294901760, %v1393_v12  ;;  %v1421_v52 = vand.u32 4294901760, %v34_v14 }
  0x95   :  { %566 = vmatpush.xpose.msrb.mxu2 %v1296_v43  ;;  %v665_v31 = vsub.f32 %v1375_v47, %v664_v21  ;;  %v676_v19 = vand.u32 4294901760, %v1409_v15 }
  0x96   :  { %v671_v35 = vsub.f32 %v1393_v12, %v670_v28 }
  0x97   :  { %482 = vmatpush.xpose.msrb.mxu0 %v1593_v58  ;;  %527 = vmatpush.xpose.msrb.mxu1 %v1070_v36  ;;  %v660_v36 = vand.u32 4294901760, %v659_v10  ;;  %v666_v26 = vand.u32 4294901760, %v665_v31  ;;  %v677_v10 = vsub.f32 %v1409_v15, %v676_v19  ;;  %v1598_v31 = vand.u32 4294901760, %v1188_v56 }
  0x98   :  { %649 = vmatpush.xpose.msrb.mxu3 %v648_v20  ;;  %v1412_v20 = vand.u32 4294901760, %v987_v44 }
  0x99   :  { %568 = vmatpush.xpose.msrb.mxu2 %v1316_v16 }
  0x9a   :  { %v1426_v58 = vsub.f32 %v987_v44, %v1412_v20  ;;  %v1597_v44 = vand.u32 4294901760, %v1169_v33 }
  0x9b   :  { %486 = vmatpush.xpose.msrb.mxu0 %v1594_v22  ;;  %529 = vmatpush.xpose.msrb.mxu1 %v1080_v45  ;;  %v1595_v45 = vand.u32 4294901760, %v1131_v8  ;;  %v1596_v8 = vand.u32 4294901760, %v1153_v50  ;;  %v1437_v22 = vsub.f32 %v34_v14, %v1421_v52  ;;  %v1599_v14 = vand.u32 4294901760, %v1205_v62  ;;  %v1602_v62 = vld [vmem:[#allocation6_spill] sm:$0xff] }
  0x9c   :  { %655 = vmatpush.xpose.msrb.mxu3 %v654_v57  ;;  %v682_v57 = vand.u32 4294901760, %v1426_v58 }
  0x9d   :  { %570 = vmatpush.xpose.msrb.mxu2 %v1334_v46 }
  0x9e   :  { %v683_v50 = vsub.f32 %v1426_v58, %v682_v57 }
  0x9f   :  { %490 = vmatpush.xpose.msrb.mxu0 %v1595_v45  ;;  %531 = vmatpush.xpose.msrb.mxu1 %v1092_v54  ;;  %v672_v54 = vand.u32 4294901760, %v671_v35 }
  0xa0   :  { %661 = vmatpush.xpose.msrb.mxu3 %v660_v36  ;;  %v583_v36 = vand.u32 4294901760, %v1437_v22  ;;  %v684_v33 = vand.u32 4294901760, %v683_v50 }
  0xa1   :  { %572 = vmatpush.xpose.msrb.mxu2 %v1343_v27 }
  0xa3   :  { %494 = vmatpush.xpose.msrb.mxu0 %v1596_v8  ;;  %533 = vmatpush.xpose.msrb.mxu1 %v1106_v1  ;;  %v678_v1 = vand.u32 4294901760, %v677_v10 }
  0xa4   :  { %667 = vmatpush.xpose.msrb.mxu3 %v666_v26 }
  0xa5   :  { %574 = vmatpush.xpose.msrb.mxu2 %v1362_v23 }
  0xa7   :  { %498 = vmatpush.xpose.msrb.mxu0 %v1597_v44  ;;  %535 = vmatpush.xpose.msrb.mxu1 %v1116_v4  ;;  %v584_v4 = vsub.f32 %v1437_v22, %v583_v36 }
  0xa8   :  { %673 = vmatpush.xpose.msrb.mxu3 %v672_v54 }
  0xa9   :  { %576 = vmatpush.xpose.msrb.mxu2 %v1381_v53  ;;  %v585_v56 = vand.u32 4294901760, %v584_v4 }
  0xab   :  { %502 = vmatpush.xpose.msrb.mxu0 %v1598_v31  ;;  %537 = vmatpush.xpose.msrb.mxu1 %v1138_v34  ;;  %v1600_v34 = vand.u32 4294901760, %v1176_v60 }
  0xac   :  { %679 = vmatpush.xpose.msrb.mxu3 %v678_v1 }
  0xad   :  { %578 = vmatpush.xpose.msrb.mxu2 %v1396_v32 }
  0xaf   :  { %506 = vmatpush.xpose.msrb.mxu0 %v1599_v14  ;;  %539 = vmatpush.xpose.msrb.mxu1 %v1149_v48  ;;  %v1601_v48 = vand.u32 4294901760, %v1192_v38 }
  0xb0   :  { %685 = vmatpush.xpose.msrb.mxu3 %v684_v33 }
  0xb1   :  { %580 = vmatpush.xpose.msrb.mxu2 %v1412_v20 }
  0xb2   :  { %508 = vmatmul.f32.vlgmr.msrb.gmra.mxu0 %v1320_v40 }
  0xb3   :  { %693 = vmatpush.xpose.msra.mxu0 %v1176_v60  ;;  %541 = vmatpush.xpose.msrb.mxu1 %v1164_v17  ;;  %v1603_v60 = vand.u32 4294901760, %v1602_v62 }
  0xb4   :  { %854 = vmatpush.xpose.msra.mxu3 %v1157_v59  ;;  %586 = vmatmul.f32.vlgmr.msrb.gmra.mxu2 %v585_v56 }
  0xb5   :  { %787 = vmatpush.xpose.msra.mxu2 %v1600_v34  ;;  %687 = vmatmul.f32.vlgmr.msrb.gmra.mxu3 %v1421_v52 }
  0xb7   :  { %696 = vmatpush.xpose.msra.mxu0 %v1192_v38  ;;  %543 = vmatpush.xpose.msrb.mxu1 %v1183_v13 }
  0xb8   :  { %856 = vmatpush.xpose.msra.mxu3 %v1172_v30 }
  0xb9   :  { %791 = vmatpush.xpose.msra.mxu2 %v1601_v48 }
  0xba   :  { %545 = vmatmul.f32.vlgmr.msrb.gmra.mxu1 %v1320_v40 }
  0xbb   :  { %699 = vmatpush.xpose.msra.mxu0 %v1602_v62  ;;  %746 = vmatpush.xpose.msra.mxu1 %v1157_v59  ;;  %v1605_v59 = vand.u32 4294901760, %v1274_v55 }
  0xbc   :  { %858 = vmatpush.xpose.msra.mxu3 %v1196_v6 }
  0xbd   :  { %795 = vmatpush.xpose.msra.mxu2 %v1603_v60 }
  0xbf   :  { %702 = vmatpush.xpose.msra.mxu0 %v1230_v39  ;;  %748 = vmatpush.xpose.msra.mxu1 %v1172_v30  ;;  %v1604_v30 = vand.u32 4294901760, %v1266_v41 }
  0xc0   :  { %860 = vmatpush.xpose.msra.mxu3 %v1216_v3 }
  0xc1   :  { %799 = vmatpush.xpose.msra.mxu2 %v610_v42 }
  0xc3   :  { %705 = vmatpush.xpose.msra.mxu0 %v1249_v29  ;;  %750 = vmatpush.xpose.msra.mxu1 %v1196_v6 }
  0xc4   :  { %862 = vmatpush.xpose.msra.mxu3 %v1233_v18 }
  0xc5   :  { %803 = vmatpush.xpose.msra.mxu2 %v616_v63  ;;  %v1606_v63 = vand.u32 4294901760, %v1290_v49 }
  0xc7   :  { %708 = vmatpush.xpose.msra.mxu0 %v1266_v41  ;;  %752 = vmatpush.xpose.msra.mxu1 %v1216_v3 }
  0xc8   :  { %864 = vmatpush.xpose.msra.mxu3 %v1252_v2 }
  0xc9   :  { %807 = vmatpush.xpose.msra.mxu2 %v1604_v30 }
  0xcb   :  { %711 = vmatpush.xpose.msra.mxu0 %v1274_v55  ;;  %754 = vmatpush.xpose.msra.mxu1 %v1233_v18 }
  0xcc   :  { %866 = vmatpush.xpose.msra.mxu3 %v1258_v5 }
  0xcd   :  { %811 = vmatpush.xpose.msra.mxu2 %v1605_v59 }
  0xcf   :  { %714 = vmatpush.xpose.msra.mxu0 %v1290_v49  ;;  %756 = vmatpush.xpose.msra.mxu1 %v1252_v2 }
  0xd0   :  { %868 = vmatpush.xpose.msra.mxu3 %v1277_v37 }
  0xd1   :  { %815 = vmatpush.xpose.msra.mxu2 %v1606_v63 }
  0xd3   :  { %717 = vmatpush.xpose.msra.mxu0 %v1313_v7  ;;  %758 = vmatpush.xpose.msra.mxu1 %v1258_v5 }
  0xd4   :  { %870 = vmatpush.xpose.msra.mxu3 %v1296_v43 }
  0xd5   :  { %819 = vmatpush.xpose.msra.mxu2 %v640_v25 }
  0xd7   :  { %720 = vmatpush.xpose.msra.mxu0 %v1331_v24  ;;  %760 = vmatpush.xpose.msra.mxu1 %v1277_v37  ;;  %v890_v24 = vstv %s1557_s2 }
  0xd8   :  { %872 = vmatpush.xpose.msra.mxu3 %v1316_v16 }
  0xd9   :  { %823 = vmatpush.xpose.msra.mxu2 %v646_v0 }
  0xdb   :  { %723 = vmatpush.xpose.msra.mxu0 %v1351_v11  ;;  %762 = vmatpush.xpose.msra.mxu1 %v1296_v43 }
  0xdc   :  { %874 = vmatpush.xpose.msra.mxu3 %v1334_v46 }
  0xdd   :  { %827 = vmatpush.xpose.msra.mxu2 %v652_v9 }
  0xdf   :  { %726 = vmatpush.xpose.msra.mxu0 %v1359_v51  ;;  %764 = vmatpush.xpose.msra.mxu1 %v1316_v16 }
  0xe0   :  { %876 = vmatpush.xpose.msra.mxu3 %v1343_v27 }
  0xe1   :  { %831 = vmatpush.xpose.msra.mxu2 %v658_v61 }
  0xe3   :  { %729 = vmatpush.xpose.msra.mxu0 %v1375_v47  ;;  %766 = vmatpush.xpose.msra.mxu1 %v1334_v46 }
  0xe4   :  { %878 = vmatpush.xpose.msra.mxu3 %v1362_v23 }
  0xe5   :  { %835 = vmatpush.xpose.msra.mxu2 %v664_v21 }
  0xe7   :  { %732 = vmatpush.xpose.msra.mxu0 %v1393_v12  ;;  %768 = vmatpush.xpose.msra.mxu1 %v1343_v27 }
  0xe8   :  { %880 = vmatpush.xpose.msra.mxu3 %v1381_v53 }
  0xe9   :  { %839 = vmatpush.xpose.msra.mxu2 %v670_v28 }
  0xeb   :  { %735 = vmatpush.xpose.msra.mxu0 %v1409_v15  ;;  %770 = vmatpush.xpose.msra.mxu1 %v1362_v23 }
  0xec   :  { %882 = vmatpush.xpose.msra.mxu3 %v1396_v32 }
  0xed   :  { %843 = vmatpush.xpose.msra.mxu2 %v676_v19 }
  0xef   :  { %738 = vmatpush.xpose.msra.mxu0 %v1426_v58  ;;  %772 = vmatpush.xpose.msra.mxu1 %v1381_v53 }
  0xf0   :  { %884 = vmatpush.xpose.msra.mxu3 %v1412_v20 }
  0xf1   :  { %847 = vmatpush.xpose.msra.mxu2 %v682_v57 }
  0xf2   :  { %741 = vmatmul.f32.vlgmr.msra.gmra.mxu0 %v1437_v22 }
  0xf3   :  { %774 = vmatpush.xpose.msra.mxu1 %v1396_v32  ;;  %886 = vmatmul.f32.vlgmr.msra.gmra.mxu3 %v1421_v52 }
  0xf4   :  { %849 = vmatmul.f32.vlgmr.msra.gmra.mxu2 %v1421_v52 }
  0xf7   :  { %776 = vmatpush.xpose.msra.mxu1 %v1412_v20 }
  0xfa   :  { %780 = vmatmul.f32.vlgmr.msra.gmra.mxu1 %v583_v36 }
 0x105   :  { %v347_v2 = vpop.f32.mrf.mxu1 }
 0x10d   :  { %v246_v3 = vpop.f32.mrf.mxu0  ;;  %v401_v13 = vpop.f32.mrf.mxu2 }
 0x10e   :  { %v348_v17 = vadd.f32 %v347_v2, %v246_v3 }
 0x110   :  { %v402_v38 = vadd.f32 %v401_v13, %v348_v17  ;;  %v440_v6 = vpop.f32.mrf.mxu3 }
 0x112   :  { %v441_v41 = vadd.f32 %v440_v6, %v402_v38 }
 0x12f   :  { %v509_v39 = vpop.f32.mrf.mxu0 }
 0x130   :  { %v510_v18 = vadd.f32 %v509_v39, %v441_v41 }
 0x137   :  { %v546_v42 = vpop.f32.mrf.mxu1  ;;  %v587_v5 = vpop.f32.mrf.mxu2 }
 0x138   :  { %v547_v29 = vadd.f32 %v546_v42, %v510_v18  ;;  %v688_v37 = vpop.f32.mrf.mxu3 }
 0x13a   :  { %v588_v55 = vadd.f32 %v587_v5, %v547_v29 }
 0x13c   :  { %v689_v49 = vadd.f32 %v688_v37, %v588_v55 }
 0x16f   :  { %v742_v46 = vpop.f32.mrf.mxu0 }
 0x170   :  { %v743_v43 = vadd.f32 %v742_v46, %v689_v49 }
 0x176   :  { %v887_v40 = vpop.f32.mrf.mxu3 }
 0x177   :  { %v781_v11 = vpop.f32.mrf.mxu1  ;;  %v850_v7 = vpop.f32.mrf.mxu2 }
 0x178   :  { %v782_v16 = vadd.f32 %v781_v11, %v743_v43 }
 0x17a   :  { %v851_v25 = vadd.f32 %v850_v7, %v782_v16 }
 0x17c   :  { %v888_v27 = vadd.f32 %v887_v40, %v851_v25 }
 0x17e   :  { %v891_v0 = vadd.f32 %v890_v24, %v888_v27 }
 0x180   :  { %892 = vst [vmem:[%s1558_s3] sm:$0x1] %v891_v0 }
 0x181   :  { %897 = vsyncpa [#allocation4], 1 }

</bundles_post_ra>
